<compile_context>
chip_gen: v7x
topology: tpu7x:2x2x1
jax: 0.10.0
libtpu: 0.0.40
codegen_flags: <defaults>
</compile_context>

<pallas_src>
import math

import jax
import jax.numpy as jnp
from jax.experimental import pallas as pl
from jax.experimental.pallas import tpu as pltpu

_SMALL_LIMIT_BYTES = 2 << 20      # <= 2 MiB: whole array in VMEM, no grid
_TARGET_BLOCK_BYTES = 8 << 20     # large path: ~8 MiB blocks (4-8 MiB sweet spot)
_SUBLANES = 8


def _triple_kernel(x_ref, o_ref):
    x = x_ref[...]
    # (foo + foo) + foo -- bit-identical to the PyTorch forward, dtype-safe.
    o_ref[...] = (x + x) + x


def _whole_array_call(x: jax.Array) -> jax.Array:
    # No grid, no pipelining scaffolding -> minimal fixed overhead; the array
    # keeps its native layout so XLA emits no relayout copies around the call.
    return pl.pallas_call(
        _triple_kernel,
        out_shape=jax.ShapeDtypeStruct(x.shape, x.dtype),
        in_specs=[pl.BlockSpec(memory_space=pltpu.MemorySpace.VMEM)],
        out_specs=pl.BlockSpec(memory_space=pltpu.MemorySpace.VMEM),
    )(x)


def module6_forward(foo: jax.Array) -> jax.Array:
    """Pallas TPU implementation of Module6.forward (== (foo+foo)+foo)."""
    if foo.ndim < 2 or foo.nbytes <= _SMALL_LIMIT_BYTES:
        # Small / low-rank case: native shape, whole-array VMEM block.
        # TODO(synk): a huge rank-0/1 array would need a lane-dense retile here.
        return _whole_array_call(foo)

    orig_shape = foo.shape
    # Merge leading dims only -- layout-preserving (minor two dims unchanged).
    if foo.ndim > 3:
        lead = math.prod(orig_shape[:-2])
        x = foo.reshape(lead, orig_shape[-2], orig_shape[-1])
    else:
        x = foo

    L = x.shape[0]
    per_row_bytes = x.dtype.itemsize * math.prod(x.shape[1:])
    tile = max(1, _TARGET_BLOCK_BYTES // per_row_bytes)
    tile = min(tile, L)

    # v7x has 2 TensorCores: keep the parallel grid at >=2 (even) steps.
    num_blocks = pl.cdiv(L, tile)
    if L > 1:
        num_blocks = max(num_blocks, 2)
        num_blocks = 2 * pl.cdiv(num_blocks, 2)
        tile = pl.cdiv(L, num_blocks)
    if x.ndim == 2:
        # Tiling the sublane axis: keep the tile a multiple of 8 (or full).
        # TODO(synk): pathological 2D shapes with multi-MiB rows would need
        # lane-axis tiling instead.
        tile = min(L, pl.cdiv(tile, _SUBLANES) * _SUBLANES)
    num_blocks = pl.cdiv(L, tile)

    block_shape = (tile,) + x.shape[1:]
    block_bytes = x.dtype.itemsize * math.prod(block_shape)
    # in + out, double-buffered, plus headroom. Capped at 48 MiB so it fits
    # v7x's 64 MiB physical VMEM; explicit so v5e's 16 MiB scoped default
    # does not shrink the pipeline.
    vmem_limit = int(min(4 * block_bytes + (8 << 20), 48 << 20))

    if x.ndim == 2:
        index_map = lambda i: (i, 0)
    else:
        index_map = lambda i: (i, 0, 0)

    out = pl.pallas_call(
        _triple_kernel,
        out_shape=jax.ShapeDtypeStruct(x.shape, x.dtype),
        grid=(num_blocks,),
        in_specs=[pl.BlockSpec(block_shape, index_map)],
        out_specs=pl.BlockSpec(block_shape, index_map),
        compiler_params=pltpu.CompilerParams(
            dimension_semantics=("parallel",),
            vmem_limit_bytes=vmem_limit,
        ),
    )(x)
    return out.reshape(orig_shape)


if __name__ == "__main__":
    key = jax.random.PRNGKey(0)
    # NCHW input, small shapes: batch=2, channels=4, spatial=16x16
    foo = jax.random.normal(key, (2, 4, 16, 16), dtype=jnp.float32)

    out = module6_forward(foo)
    out = jax.block_until_ready(out)

    # sanity check against reference (foo + foo) + foo
    ref = (foo + foo) + foo
    assert out.shape == foo.shape and out.dtype == foo.dtype
    assert jnp.allclose(out, ref, atol=1e-6, rtol=1e-6)

    print("KERNEL_OK")
</pallas_src>

<mosaic_0001>
module attributes {stable_mosaic.version = 11 : i64} {
  func.func @_triple_kernel(%arg0: memref<2x4x16x16xf32, #tpu.memory_space<vmem>>, %arg1: memref<2x4x16x16xf32, #tpu.memory_space<vmem>>) attributes {dimension_semantics = [], scalar_prefetch = 0 : i64, scratch_operands = 0 : i64, tpu.core_type = #tpu.core_type<tc>} {
    %c0 = arith.constant 0 : index
    %c0_0 = arith.constant 0 : index
    %c0_1 = arith.constant 0 : index
    %c0_2 = arith.constant 0 : index
    %0 = vector.load %arg0[%c0, %c0_0, %c0_1, %c0_2] : memref<2x4x16x16xf32, #tpu.memory_space<vmem>>, vector<2x4x16x16xf32>
    %1 = arith.addf %0, %0 : vector<2x4x16x16xf32>
    %2 = arith.addf %1, %0 : vector<2x4x16x16xf32>
    %c0_3 = arith.constant 0 : index
    %c0_4 = arith.constant 0 : index
    %c0_5 = arith.constant 0 : index
    %c0_6 = arith.constant 0 : index
    %3 = vector.load %arg1[%c0_3, %c0_4, %c0_5, %c0_6] : memref<2x4x16x16xf32, #tpu.memory_space<vmem>>, vector<2x4x16x16xf32>
    tpu.vector_store %arg1[%c0_3, %c0_4, %c0_5, %c0_6], %2 {strides = array<i32>} : memref<2x4x16x16xf32, #tpu.memory_space<vmem>>, vector<2x4x16x16xf32>,
    return
  }
}

</mosaic_0001>

<bundles_post_ra>
// kernel: tpu_custom_call.1
= control target key start
LH: loop header
LB: loop body
LE: loop exit
PB: predicated region body
PF: predicated region fallthrough
CT: control target
= control target key end

     0   :  { %6 = vsyncpa [#allocation3], 0  ;;  %s217_s0 = inlined_call_operand.hbm [shape: f32[2,4,16,16], index: 0, kind: input, shape index: {}]   ;;  %s218_s1 = inlined_call_operand.hbm [shape: f32[2,4,16,16], index: 1, kind: output, shape index: {}]  }
   0x1   :  { %7 = vsyncpa [#allocation4], 0  ;;  %s157_s6 = smov [#allocation2]   ;;  %s109_s10 = scalar_lea.hbm %s217_s0, 2048 }
   0x2   :  { %s13_s7 = sshll.u32 %s157_s6, 4  ;;  %p110_p0 = scmp.ne.s32.totalorder %s217_s0, %s109_s10  ;;  %s14_s7 = int_to_ptr.vmem [resolvable:$true] %s13_s7 }
   0x3   :  { %p113_p1 = scmp.lt.u32.totalorder %s109_s10, %s217_s0 }
   0x5   :  { %p115_p2 = pnand %p113_p1, %p110_p0 }
   0x7   :  { %118 = shalt.err (!%p115_p2)
}
   0x8   :  { %s119_s15 = scalar_lea.vmem %s14_s7, 2048  ;;  %p124_p4 = scmp.lt.s32.totalorder %s14_s7, %s14_s7 }
   0x9   :  { %p120_p3 = scmp.ne.s32.totalorder %s14_s7, %s119_s15  ;;  %p125_p5 = scmp.lt.s32.totalorder %s119_s15, %s119_s15 }
   0xb   :  { %p126_p6 = por %p125_p5, %p124_p4 }
   0xd   :  { %p127_p7 = pnand %p126_p6, %p120_p3 }
   0xf   :  { %130 = shalt.err (!%p127_p7)
}
  0x10   :  { %s158_s16 = smov 128   ;;  %s159_s17 = smov 8  }
  0x11   :  { %19 = dma.hbm_to_vmem [thread:$0]  %s217_s0, 2048, %s14_s7, [#allocation3], %s158_s16, %s158_s16, %s159_s17  }
  0x12   :  { %153 = dma.done.wait [#allocation3], 2048  }
  0x13   :  { %154 = vsyncadd [#allocation3], 4294965248  ;;  %v23_v0 = vld [vmem:[#allocation2] sm:$0xff]  ;;  %v24_v1 = vld [vmem:[#allocation2 + $0x8] sm:$0xff]  ;;  %vm71_vm0 = vcmask 130048   ;;  %s160_s0 = smov [#allocation5]  }
  0x14   :  { %v25_v2 = vld [vmem:[#allocation2 + $0x10] sm:$0xff]  ;;  %v39_v3 = vadd.f32 %v23_v0, %v23_v0  ;;  %v40_v4 = vadd.f32 %v24_v1, %v24_v1  ;;  %v26_v6 = vld [vmem:[#allocation2 + $0x18] sm:$0xff]  ;;  %v27_v7 = vld [vmem:[#allocation2 + $0x20] sm:$0xff]  ;;  %s93_s20 = sshll.u32 %s160_s0, 4  ;;  %s94_s20 = int_to_ptr.vmem [resolvable:$true] %s93_s20 }
  0x15   :  { %v41_v5 = vadd.f32 %v25_v2, %v25_v2  ;;  %v28_v8 = vld [vmem:[#allocation2 + $0x28] sm:$0xff]  ;;  %v42_v9 = vadd.f32 %v26_v6, %v26_v6  ;;  %v43_v10 = vadd.f32 %v27_v7, %v27_v7  ;;  %v29_v12 = vld [vmem:[#allocation2 + $0x30] sm:$0xff]  ;;  %v30_v13 = vld [vmem:[#allocation2 + $0x38] sm:$0xff]  ;;  %s131_s21 = scalar_lea.vmem %s94_s20, 2048  ;;  %p136_p9 = scmp.lt.s32.totalorder %s94_s20, %s94_s20 }
  0x16   :  { %v44_v11 = vadd.f32 %v28_v8, %v28_v8  ;;  %v31_v14 = vld [vmem:[#allocation2 + $0x40] sm:$0xff]  ;;  %v55_v15 = vadd.f32 %v39_v3, %v23_v0  ;;  %v56_v16 = vadd.f32 %v40_v4, %v24_v1  ;;  %v45_v18 = vadd.f32 %v29_v12, %v29_v12  ;;  %v32_v19 = vld [vmem:[#allocation2 + $0x48] sm:$0xff]  ;;  %v33_v20 = vld [vmem:[#allocation2 + $0x50] sm:$0xff]  ;;  %p132_p8 = scmp.ne.s32.totalorder %s94_s20, %s131_s21  ;;  %p137_p10 = scmp.lt.s32.totalorder %s131_s21, %s131_s21 }
  0x17   :  { %v57_v17 = vadd.f32 %v41_v5, %v25_v2  ;;  %v34_v21 = vld [vmem:[#allocation2 + $0x58] sm:$0xff]  ;;  %v58_v22 = vadd.f32 %v42_v9, %v26_v6  ;;  %v59_v23 = vadd.f32 %v43_v10, %v27_v7  ;;  %v46_v25 = vadd.f32 %v30_v13, %v30_v13  ;;  %v35_v26 = vld [vmem:[#allocation2 + $0x60] sm:$0xff]  ;;  %v36_v27 = vld [vmem:[#allocation2 + $0x68] sm:$0xff] }
  0x18   :  { %v60_v24 = vadd.f32 %v44_v11, %v28_v8  ;;  %v37_v28 = vld [vmem:[#allocation2 + $0x70] sm:$0xff]  ;;  %72 = vst.msk [vmem:[#allocation5] sm:$0xff] %vm71_vm0, %v55_v15  ;;  %73 = vst.msk [vmem:[#allocation5 + $0x8] sm:$0xff] %vm71_vm0, %v56_v16  ;;  %v61_v29 = vadd.f32 %v45_v18, %v29_v12  ;;  %v47_v30 = vadd.f32 %v31_v14, %v31_v14  ;;  %v38_v33 = vld [vmem:[#allocation2 + $0x78] sm:$0xff]  ;;  %p138_p11 = por %p137_p10, %p136_p9 }
  0x19   :  { %74 = vst.msk [vmem:[#allocation5 + $0x10] sm:$0xff] %vm71_vm0, %v57_v17  ;;  %v48_v31 = vadd.f32 %v32_v19, %v32_v19  ;;  %v49_v32 = vadd.f32 %v33_v20, %v33_v20  ;;  %75 = vst.msk [vmem:[#allocation5 + $0x18] sm:$0xff] %vm71_vm0, %v58_v22  ;;  %v62_v34 = vadd.f32 %v46_v25, %v30_v13 }
  0x1a   :  { %76 = vst.msk [vmem:[#allocation5 + $0x20] sm:$0xff] %vm71_vm0, %v59_v23  ;;  %77 = vst.msk [vmem:[#allocation5 + $0x28] sm:$0xff] %vm71_vm0, %v60_v24  ;;  %v50_v35 = vadd.f32 %v34_v21, %v34_v21  ;;  %v51_v36 = vadd.f32 %v35_v26, %v35_v26  ;;  %v52_v37 = vadd.f32 %v36_v27, %v36_v27  ;;  %p139_p12 = pnand %p138_p11, %p132_p8 }
  0x1b   :  { %78 = vst.msk [vmem:[#allocation5 + $0x30] sm:$0xff] %vm71_vm0, %v61_v29  ;;  %v63_v38 = vadd.f32 %v47_v30, %v31_v14  ;;  %v64_v39 = vadd.f32 %v48_v31, %v32_v19  ;;  %v65_v40 = vadd.f32 %v49_v32, %v33_v20  ;;  %v53_v41 = vadd.f32 %v37_v28, %v37_v28 }
  0x1c   :  { %79 = vst.msk [vmem:[#allocation5 + $0x38] sm:$0xff] %vm71_vm0, %v62_v34  ;;  %v66_v42 = vadd.f32 %v50_v35, %v34_v21  ;;  %v67_v43 = vadd.f32 %v51_v36, %v35_v26  ;;  %v68_v44 = vadd.f32 %v52_v37, %v36_v27  ;;  %v54_v45 = vadd.f32 %v38_v33, %v38_v33 }
  0x1d   :  { %80 = vst.msk [vmem:[#allocation5 + $0x40] sm:$0xff] %vm71_vm0, %v63_v38  ;;  %81 = vst.msk [vmem:[#allocation5 + $0x48] sm:$0xff] %vm71_vm0, %v64_v39  ;;  %v69_v46 = vadd.f32 %v53_v41, %v37_v28 }
  0x1e   :  { %82 = vst.msk [vmem:[#allocation5 + $0x50] sm:$0xff] %vm71_vm0, %v65_v40  ;;  %83 = vst.msk [vmem:[#allocation5 + $0x58] sm:$0xff] %vm71_vm0, %v66_v42  ;;  %v70_v47 = vadd.f32 %v54_v45, %v38_v33 }
  0x1f   :  { %84 = vst.msk [vmem:[#allocation5 + $0x60] sm:$0xff] %vm71_vm0, %v67_v43  ;;  %85 = vst.msk [vmem:[#allocation5 + $0x68] sm:$0xff] %vm71_vm0, %v68_v44 }
  0x20   :  { %86 = vst.msk [vmem:[#allocation5 + $0x70] sm:$0xff] %vm71_vm0, %v69_v46  ;;  %87 = vst.msk [vmem:[#allocation5 + $0x78] sm:$0xff] %vm71_vm0, %v70_v47 }
  0x21   :  { %142 = shalt.err (!%p139_p12)
}
  0x22   :  { %s143_s24 = scalar_lea.hbm %s218_s1, 2048 }
  0x23   :  { %p144_p13 = scmp.ne.s32.totalorder %s218_s1, %s143_s24  ;;  %p147_p0 = scmp.lt.u32.totalorder %s143_s24, %s218_s1 }
  0x25   :  { %p149_p1 = pnand %p147_p0, %p144_p13 }
  0x27   :  { %152 = shalt.err (!%p149_p1)
}
  0x28   :  { %99 = dma.vmem_to_hbm [thread:$0]  %s94_s20, 2048, %s218_s1, [#allocation4], %s158_s16, %s158_s16, %s159_s17  }
  0x29   :  { %155 = dma.done.wait [#allocation4], 2048  }
  0x2a   :  { %156 = vsyncadd [#allocation4], 4294965248 }
  0x2b   :  { %103 = vsyncpa [#allocation3], 1 }
  0x2c   :  { %104 = vsyncpa [#allocation4], 1 }

</bundles_post_ra>
